<compile_context>
chip_gen: v7x
topology: tpu7x:2x2x1
jax: 0.10.0
libtpu: 0.0.40
codegen_flags: <defaults>
</compile_context>

<pallas_src>
import functools
import math

import jax
import jax.numpy as jnp
from jax import lax
from jax.experimental import pallas as pl
from jax.experimental.pallas import tpu as pltpu


def _gather_kernel(ids_ref, table_ref, out_ref, sem, *, block_lookups):
    """Gather `block_lookups` rows of the HBM table into the VMEM output block.

    ids_ref   : SMEM (num_lookups_padded,) int32  (scalar prefetch)
    table_ref : HBM  (vocab, D)                   (memory_space=pl.ANY)
    out_ref   : VMEM (block_lookups, D)           (auto-pipelined output block)
    sem       : DMA semaphore
    """
    base = pl.program_id(0) * block_lookups

    def issue(j, carry):
        row = ids_ref[base + j]
        pltpu.make_async_copy(
            table_ref.at[pl.ds(row, 1), :],
            out_ref.at[pl.ds(j, 1), :],
            sem,
        ).start()
        return carry

    lax.fori_loop(0, block_lookups, issue, 0)

    def drain(j, carry):
        # Wait descriptor only needs the semaphore + matching dst shape.
        pltpu.make_async_copy(
            table_ref.at[pl.ds(0, 1), :],
            out_ref.at[pl.ds(j, 1), :],
            sem,
        ).wait()
        return carry

    lax.fori_loop(0, block_lookups, drain, 0)


def one_embedding_forward(ids, table, table_offsets, *, block_lookups=64):
    """ids: (B, T) int; table: (vocab, D) f32; table_offsets: (T,) int32."""
    batch, num_tables = ids.shape
    vocab, emb_dim = table.shape

    # Global row id = local id + offset of its table (column index -> table).
    gids = (ids.astype(jnp.int32) + table_offsets[None, :].astype(jnp.int32)).reshape(-1)
    n = gids.shape[0]
    n_blocks = pl.cdiv(n, block_lookups)
    n_pad = n_blocks * block_lookups
    if n_pad != n:
        gids = jnp.pad(gids, (0, n_pad - n))  # padded lookups hit row 0, sliced off below

    kernel = functools.partial(_gather_kernel, block_lookups=block_lookups)
    bytes_accessed = 2 * n_pad * emb_dim * table.dtype.itemsize + n_pad * 4

    out = pl.pallas_call(
        kernel,
        out_shape=jax.ShapeDtypeStruct((n_pad, emb_dim), table.dtype),
        grid_spec=pltpu.PrefetchScalarGridSpec(
            num_scalar_prefetch=1,
            grid=(n_blocks,),
            in_specs=[pl.BlockSpec(memory_space=pl.ANY)],  # table stays in HBM
            out_specs=pl.BlockSpec((block_lookups, emb_dim),
                                   lambda i, _ids: (i, 0)),
            scratch_shapes=[pltpu.SemaphoreType.DMA],
        ),
        compiler_params=pltpu.CompilerParams(
            dimension_semantics=("parallel",)),
        cost_estimate=pl.CostEstimate(flops=0, transcendentals=0,
                                      bytes_accessed=int(bytes_accessed)),
    )(gids, table)

    return out[:n].reshape(batch, num_tables, emb_dim)


def init_one_embedding(key, table_size_array, embedding_vec_size):
    """Per-table uniform(-scale, scale) init with scale = sqrt(1/table_size),
    tables concatenated into one (vocab, D) matrix + per-table row offsets."""
    parts = []
    for ts in table_size_array:
        key, sub = jax.random.split(key)
        scale = 1.0 / math.sqrt(ts)
        parts.append(jax.random.uniform(sub, (ts, embedding_vec_size),
                                        jnp.float32, minval=-scale, maxval=scale))
    table = jnp.concatenate(parts, axis=0)
    offs, acc = [], 0
    for ts in table_size_array:
        offs.append(acc)
        acc += ts
    table_offsets = jnp.array(offs, dtype=jnp.int32)
    return table, table_offsets


if __name__ == "__main__":
    key = jax.random.PRNGKey(0)
    embedding_vec_size = 128                   # lane-dense output (multiple of 128)
    table_size_array = [1000, 500, 300, 200, 100, 400, 250, 150]
    batch = 16                                 # batch * num_tables = 128 lookups

    k_tab, k_ids = jax.random.split(key)
    table, table_offsets = init_one_embedding(k_tab, table_size_array,
                                              embedding_vec_size)

    # key_type: use int32 (ids fit comfortably; int64 keys handled identically).
    id_cols = []
    for ts in table_size_array:
        k_ids, sub = jax.random.split(k_ids)
        id_cols.append(jax.random.randint(sub, (batch,), 0, ts, dtype=jnp.int32))
    ids = jnp.stack(id_cols, axis=1)           # (batch, num_tables)

    out = one_embedding_forward(ids, table, table_offsets, block_lookups=64)
    out = jax.block_until_ready(out)

    # Pure-JAX reference gather.
    gids_ref = (ids + table_offsets[None, :]).reshape(-1)
    ref = table[gids_ref].reshape(batch, len(table_size_array), embedding_vec_size)

    assert out.shape == (batch, len(table_size_array), embedding_vec_size)
    assert jnp.allclose(out, ref), "mismatch vs reference embedding gather"

    print("KERNEL_OK")
</pallas_src>

<mosaic_0001>
module attributes {stable_mosaic.version = 11 : i64} {
  func.func @_gather_kernel(%arg0: i32, %arg1: memref<128xi32, #tpu.memory_space<smem>>, %arg2: memref<2900x128xf32, #tpu.memory_space<any>>, %arg3: memref<64x128xf32, #tpu.memory_space<vmem>>, %arg4: memref<!tpu.dma_semaphore, #tpu.memory_space<semaphore_mem>>) attributes {dimension_semantics = [#tpu.dimension_semantics<parallel>], iteration_bounds = array<i64: 2>, scalar_prefetch = 1 : i64, scratch_operands = 1 : i64, tpu.core_type = #tpu.core_type<tc>, window_params = [{}, {transform_indices = @transform_1, window_bounds = array<i64: 64, 128>}]} {
    %c64_i32 = arith.constant 64 : i32
    %0 = arith.muli %arg0, %c64_i32 : i32
    %c0_i32 = arith.constant 0 : i32
    %c64_i32_0 = arith.constant 64 : i32
    %1 = arith.addi %c0_i32, %c64_i32_0 : i32
    %c1_i32 = arith.constant 1 : i32
    scf.for %arg5 = %c0_i32 to %1 step %c1_i32  : i32 {
      %3 = arith.addi %0, %arg5 : i32
      %4 = arith.index_cast %3 : i32 to index
      %5 = memref.load %arg1[%4] : memref<128xi32, #tpu.memory_space<smem>>
      %c0_i32_6 = arith.constant 0 : i32
      %6 = tpu.memref_slice %arg2[%5, %c0_i32_6] : memref<2900x128xf32, #tpu.memory_space<any>> -> memref<1x128xf32, #tpu.memory_space<any>>
      %c0_i32_7 = arith.constant 0 : i32
      %7 = tpu.memref_slice %arg3[%arg5, %c0_i32_7] : memref<64x128xf32, #tpu.memory_space<vmem>> -> memref<1x128xf32, #tpu.memory_space<vmem>>
      tpu.enqueue_dma source(%6 : memref<1x128xf32, #tpu.memory_space<any>>) target(%7 : memref<1x128xf32, #tpu.memory_space<vmem>>) target_semaphore(%arg4 : memref<!tpu.dma_semaphore, #tpu.memory_space<semaphore_mem>>)
    }
    %c64_i32_1 = arith.constant 64 : i32
    %c0_i32_2 = arith.constant 0 : i32
    %c64_i32_3 = arith.constant 64 : i32
    %2 = arith.addi %c0_i32_2, %c64_i32_3 : i32
    %c1_i32_4 = arith.constant 1 : i32
    scf.for %arg5 = %c0_i32_2 to %2 step %c1_i32_4  : i32 {
      %c0_i32_6 = arith.constant 0 : i32
      %c0_i32_7 = arith.constant 0 : i32
      %3 = tpu.memref_slice %arg2[%c0_i32_6, %c0_i32_7] : memref<2900x128xf32, #tpu.memory_space<any>> -> memref<1x128xf32, #tpu.memory_space<any>>
      %c0_i32_8 = arith.constant 0 : i32
      %4 = tpu.memref_slice %arg3[%arg5, %c0_i32_8] : memref<64x128xf32, #tpu.memory_space<vmem>> -> memref<1x128xf32, #tpu.memory_space<vmem>>
      tpu.wait_dma2 semaphore(%arg4 : memref<!tpu.dma_semaphore, #tpu.memory_space<semaphore_mem>>) src(%3 : memref<1x128xf32, #tpu.memory_space<any>>) dst(%4 : memref<1x128xf32, #tpu.memory_space<vmem>>)
    }
    %c64_i32_5 = arith.constant 64 : i32
    return
  }
  func.func @transform_1(%arg0: i32, %arg1: memref<128xi32, #tpu.memory_space<smem>>) -> (i32, i32) {
    %c0_i32 = arith.constant 0 : i32
    %c0_i32_0 = arith.constant 0 : i32
    return %arg0, %c0_i32 : i32, i32
  }
}

</mosaic_0001>

<bundles_post_ra>
// kernel: tpu_custom_call.1
= control target key start
LH: loop header
LB: loop body
LE: loop exit
PB: predicated region body
PF: predicated region fallthrough
CT: control target
= control target key end

     0   :  { %s491_s0 = inlined_call_operand.hbm [shape: s32[128], index: 0, kind: input, shape index: {}]   ;;  %s492_s1 = inlined_call_operand.hbm [shape: f32[2900,128], index: 1, kind: input, shape index: {}]   ;;  %s493_s2 = inlined_call_operand.hbm [shape: f32[128,128], index: 2, kind: output, shape index: {}]  }
   0x1   :  { %s227_s11 = scalar_lea.hbm %s491_s0, 16 }
   0x2   :  { %p228_p0 = scmp.ne.s32.totalorder %s491_s0, %s227_s11  ;;  %p231_p1 = scmp.lt.u32.totalorder %s227_s11, %s491_s0 }
   0x4   :  { %p233_p2 = pnand %p231_p1, %p228_p0 }
   0x6   :  { %236 = shalt.err (!%p233_p2)  }
   0x7   :  { %s337_s16 = smov [#allocation4]  }
   0x8   :  { %8 = dma.hbm_to_smem %s491_s0, 16, %s337_s16, [#allocation3] }
   0x9   :  { %309 = dma.done.wait [#allocation3], 16 }
   0xa   :  { %310 = vsyncadd [#allocation3], 4294967280 }
   0xb   :  { %10 = sfence }
   0xc   :  { %11 = vsyncpa [#allocation6], 0 }
   0xd   :  { %13 = vsyncpa [#allocation6 + $0x1], 0  ;;  %s368_s19 = smov 0   ;;  %s370_s20 = smov 0  }
   0xe   :  { %s372_s21 = smov 0  }
   0xf LB: > { %s164_s0 = sadd.s32 4294967295, %s327_s21   ;;  %s385_s22 = sadd.s32 1, %s327_s21   ;;  %s327_s21 = sphi %s372_s21, %s498_s21   ;;  %s323_s20 = sphi %s370_s20, %s497_s20   ;;  %s319_s19 = sphi %s368_s19, %s496_s19  }
  0x10   : > { %s22_s23 = ssub.s32 %s327_s21, %s385_s22  ;;  %s25_s24 = sadd.s32 1, %s323_s20 }
  0x11   : > { %p23_p3 = scmp.eq.s32.totalorder %s22_s23, 0  ;;  %p165_p4 = scmp.ne.s32.totalorder %s22_s23, 0 }
  0x12   : > { %p29_p5 = scmp.eq.s32.totalorder %s327_s21, 1  ;;  %p34_p6 = scmp.ne.s32.totalorder %s323_s20, %s319_s19 }
  0x13   : > { %s394_s25 = scalar_select %p23_p3, %s323_s20, %s25_s24  }
  0x14   : > { %p396_p7 = por %p165_p4, %p29_p5  ;;  %p35_p8 = scmp.eq.s32.totalorder %s164_s0, 1 }
  0x15   : > { %p166_p10 = scmp.ge.s32.totalorder %s327_s21, 2 }
  0x16   : > { %p400_p9 = por %p35_p8, %p34_p6  ;;  %s49_s28 = sand.u32 (!%p166_p10), 1, %s323_s20  }
  0x17   : > { %44 = sbr.rel (%p166_p10) target bundleno = 98 (0x62), region = 12  ;;  %s168_s29 = sshll.u32 (!%p166_p10), %s327_s21, 6 }
  0x18   : > { %s409_s30 = sshll.u32 (!%p166_p10), %s49_s28, 6  ;;  %s412_s4 = smov (!%p166_p10), 0  }
  0x19   : > { %s51_s3 = scalar_lea.vmem (!%p166_p10), [#allocation5], %s409_s30 }
  0x1e LB: >> { %s60_s5 = sadd.s32 %s331_s4, %s168_s29  ;;  %s64_s6 = scalar_lea.vmem %s51_s3, %s331_s4 [#allocation5]  ;;  %s331_s4 = sphi %s412_s4, %s59_s4  }
  0x1f   : >> { %s61_s7 = sld [smem:[#allocation4 + %s60_s5]]  ;;  %s72_s8 = sshll.u32 %s64_s6, 4  ;;  %s73_s8 = int_to_ptr.vmem [resolvable:$true] %s72_s8 }
  0x20   : >> { %s239_s16 = scalar_lea.hbm %s492_s1, 46464 }
  0x25   : >> { %s169_s9 = sshll.u32 %s61_s7, 4 }
  0x26   : >> { %s63_s12 = scalar_lea.hbm %s492_s1, %s169_s9 }
  0x27   : >> { %s237_s13 = scalar_lea.hbm %s63_s12, 16  ;;  %p240_p12 = scmp.lt.u32.totalorder %s63_s12, %s492_s1 }
  0x28   : >> { %p238_p11 = scmp.ne.s32.totalorder %s63_s12, %s237_s13  ;;  %p241_p13 = scmp.lt.u32.totalorder %s239_s16, %s237_s13 }
  0x29   : >> { %p243_p1 = scmp.lt.u32.totalorder %s237_s13, %s63_s12 }
  0x2a   : >> { %p242_p0 = por %p241_p13, %p240_p12 }
  0x2c   : >> { %p244_p2 = por %p243_p1, %p242_p0 }
  0x2e   : >> { %p245_p3 = pnand %p244_p2, %p238_p11 }
  0x30   : >> { %248 = shalt.err (!%p245_p3)  }
  0x31   : >> { %s249_s0 = scalar_lea.vmem %s73_s8, 16  ;;  %s338_s23 = smov [#allocation5]  }
  0x32   : >> { %p250_p4 = scmp.ne.s32.totalorder %s73_s8, %s249_s0  ;;  %s251_s24 = sshll.u32 %s338_s23, 4  ;;  %s432_s24 = int_to_ptr.vmem [resolvable:$false] %s251_s24 }
  0x33   : >> { %s253_s5 = scalar_lea.vmem %s432_s24, 2048  ;;  %p254_p5 = scmp.lt.s32.totalorder %s73_s8, %s432_s24 }
  0x34   : >> { %p255_p6 = scmp.lt.s32.totalorder %s253_s5, %s249_s0 }
  0x36   : >> { %p256_p8 = por %p255_p6, %p254_p5 }
  0x38   : >> { %p257_p10 = pnand %p256_p8, %p250_p4 }
  0x3a   : >> { %260 = shalt.err (!%p257_p10)  }
  0x3b   : >> { %75 = dma.hbm_to_vmem [thread:$0]  %s63_s12, 16, %s73_s8, [#allocation2] }
  0x3c   : >> { %s59_s4 = sadd.s32 1, %s331_s4  }
  0x3d   : >> { %p56_p11 = scmp.ge.s32.totalorder %s59_s4, 64  }
  0x3e   : > { %s333_s6 = smov (%p56_p11), 0  }
  0x3f   : > { %58 = sbr.rel (!%p56_p11) target bundleno = 30 (0x1e), region = 64 }
  0x46 LB: >> { %311 = dma.done.wait [#allocation2], 16  ;;  %s335_s6 = sphi %s333_s6, %s81_s6  }
  0x47   : >> { %312 = vsyncadd [#allocation2], 4294967280  ;;  %s81_s6 = sadd.s32 1, %s335_s6  }
  0x48   : >> { %p78_p12 = scmp.ge.s32.totalorder %s81_s6, 64  }
  0x49   : > { %s176_s7 = sshll.u32 (%p78_p12), %s327_s21, 10  ;;  %s99_s9 = sshll.u32 (%p78_p12), %s51_s3, 4  ;;  %s449_s9 = int_to_ptr.vmem [resolvable:$true] %s99_s9 }
  0x4a   : > { %80 = sbr.rel (!%p78_p12) target bundleno = 70 (0x46), region = 75  ;;  %s445_s29 = scalar_lea.hbm (%p78_p12), %s493_s2, %s176_s7 }
  0x4b   : > { %s86_s10 = scalar_lea.sflag (%p78_p12), [#allocation6], %s49_s28  ;;  %s261_s11 = scalar_lea.vmem (%p78_p12), %s449_s9, 1024 }
  0x4c   : > { %p262_p13 = scmp.ne.s32.totalorder (%p78_p12), %s449_s9, %s261_s11  ;;  %p268_p2 = scmp.lt.s32.totalorder (%p78_p12), %s449_s9, %s432_s24 }
  0x4d   : > { %p269_p3 = scmp.lt.s32.totalorder (%p78_p12), %s253_s5, %s261_s11 }
  0x4e   : > { %p263_p0 = pnand (%p78_p12), %p262_p13, %p396_p7 }
  0x4f   : > { %p270_p4 = por (%p78_p12), %p269_p3, %p268_p2 }
  0x50   : > { %p264_p1 = pneg (%p78_p12), %p263_p0 }
  0x52   : > { %p271_p5 = pnand %p270_p4, %p264_p1 }
  0x54   : > { %274 = shalt.err (!%p271_p5)
}
  0x55   : > { %s275_s30 = scalar_lea.hbm %s445_s29, 1024  ;;  %s279_s12 = scalar_lea.hbm %s493_s2, 2048 }
  0x56   : > { %p276_p6 = scmp.ne.s32.totalorder %s445_s29, %s275_s30  ;;  %p280_p11 = scmp.lt.u32.totalorder %s445_s29, %s493_s2 }
  0x57   : > { %p281_p12 = scmp.lt.u32.totalorder %s279_s12, %s275_s30  ;;  %p283_p0 = scmp.lt.u32.totalorder %s275_s30, %s445_s29 }
  0x58   : > { %p277_p8 = pnand %p276_p6, %p396_p7 }
  0x59   : > { %p282_p13 = por %p281_p12, %p280_p11 }
  0x5a   : > { %p278_p10 = pneg %p277_p8 }
  0x5b   : > { %p284_p1 = por %p283_p0, %p282_p13 }
  0x5d   : > { %p285_p2 = pnand %p284_p1, %p278_p10 }
  0x5f   : > { %288 = shalt.err (!%p285_p2)
}
  0x60   : > { %s339_s15 = smov 128   ;;  %s340_s16 = smov 8  }
  0x61   : > { %177 = dma.vmem_to_hbm [thread:$0]  (%p396_p7), %s449_s9, 1024, %s445_s29, %s86_s10, %s339_s15, %s339_s15, %s340_s16  }
  0x62 PF: > { %p183_p3 = scmp.ge.s32.totalorder %s327_s21, 1  ;;  %s114_s17 = sand.u32 1, %s319_s19  }
  0x63   : > { %s115_s18 = scalar_lea.sflag [#allocation6], %s114_s17 }
  0x64   : > { %p180_p4 = pnand %p183_p3, %p400_p9 }
  0x66   : > { %314 = dma.done.wait (!%p180_p4), %s115_s18, 1024  }
  0x67   : > { %316 = vsyncadd (!%p180_p4), %s115_s18, 4294966272  ;;  %p16_p5 = scmp.ge.s32.totalorder %s385_s22, 3   ;;  %s496_s19 = smov %s323_s20 }
  0x68   : > { %s497_s20 = smov %s394_s25  ;;  %s498_s21 = smov %s385_s22 }
  0x69   :  { %18 = sbr.rel (!%p16_p5) target bundleno = 15 (0xf), region = 86 }
  0x70   :  { %120 = vsyncpa [#allocation6], 1 }
  0x71   :  { %122 = vsyncpa [#allocation6 + $0x1], 1 }
  0x72   :  { %123 = vsyncmov [#allocation2] }
  0x75   :  { %s124_s21 = vpop.sfrf %123 }
  0x76   :  { %p175_p7 = scmp.ne.s32.totalorder %s124_s21, 0 }
  0x78   :  { %128 = shalt.err (%p175_p7)  }

</bundles_post_ra>
